<compile_context>
chip_gen: v7x
topology: tpu7x:2x2x1
jax: 0.10.0
libtpu: 0.0.40
codegen_flags: <defaults>
</compile_context>

<pallas_src>
import functools

import jax
import jax.numpy as jnp
import numpy as np
from jax.experimental import pallas as pl
from jax.experimental.pallas import tpu as pltpu


# ----------------------------- configuration ------------------------------
INPT_DIM = 8
CTXT_DIM = 4
HDDN_DIM = 32
NUM_BLOCKS = 3              # -> 2 hidden MLPBlocks after the input block
OUTP_DIM = INPT_DIM         # outp_dim=0 defaults to inpt_dim when do_out=True
DO_RES = True
LRELU_SLOPE = 0.01          # torch.nn.LeakyReLU default
BATCH = 2048                # demo batch: 4 grid steps at TILE_B=512
TILE_B_MAX = 512            # batch tile (sweep 512-2048; keep >=4 grid steps
                            # so v7x's 2 TCs each get >=2 steps to pipeline)


def _lrelu(x):
    return jnp.where(x > 0, x, LRELU_SLOPE * x)


# ------------------------------- the kernel -------------------------------
def make_dense_kernel(dims, inpt_dim, ctxt_dim, do_res):
    """Kernel body for a fixed network structure.

    dims: tuple of (in_features, out_features) per linear layer, in order
          (input block, hidden blocks..., output block).
    Layout inside the kernel: activations are [features, TILE_B] (batch on the
    128-lane axis); weights come from one packed bf16 slab [n, M_max, K_max];
    biases from one packed f32 slab [M_max, n] (column i = bias of layer i).
    """
    n_layers = len(dims)

    def kernel(x_ref, c_ref, w_ref, b_ref, out_ref):
        # x_ref: [TILE_B, inpt] f32, c_ref: [TILE_B, ctxt] f32 (as the module
        # receives them); the "transpose" is folded into the contraction below.
        x_bf = x_ref[...].astype(jnp.bfloat16)          # [TB, inpt]
        c_bf = c_ref[...].astype(jnp.bfloat16)          # [TB, ctxt]
        b_all = b_ref[...]                              # [M_max, n] f32

        # ----- input block: Linear(inpt+ctxt -> H) + LeakyReLU -----
        k0, m0 = dims[0]
        w0 = w_ref[0]                                   # [M_max, K_max] bf16
        # W @ [x; ctxt]^T done as two contractions (no in-kernel concat/pad).
        h = jnp.einsum('mk,tk->mt', w0[:m0, :inpt_dim], x_bf,
                       preferred_element_type=jnp.float32)
        if ctxt_dim:
            h = h + jnp.einsum('mk,tk->mt',
                               w0[:m0, inpt_dim:inpt_dim + ctxt_dim], c_bf,
                               preferred_element_type=jnp.float32)
        h = _lrelu(h + b_all[:m0, 0:1])                 # f32 [H, TB]

        # ----- hidden blocks: Linear(H -> H) + LeakyReLU (+ residual) -----
        for i in range(1, n_layers - 1):
            k, m = dims[i]
            w = w_ref[i]
            h_new = jnp.dot(w[:m, :k], h.astype(jnp.bfloat16),
                            preferred_element_type=jnp.float32)
            h_new = _lrelu(h_new + b_all[:m, i:i + 1])
            h = h_new + h if (do_res and m == k) else h_new

        # ----- output block: Linear(H -> outp), act_o='none' -----
        k, m = dims[-1]
        w_o = w_ref[n_layers - 1]
        o = jnp.dot(w_o[:m, :k], h.astype(jnp.bfloat16),
                    preferred_element_type=jnp.float32) + b_all[:m, n_layers - 1:n_layers]
        out_ref[...] = o.astype(out_ref.dtype)          # bf16 lane-dense store

    return kernel


# ------------------------------ the wrapper -------------------------------
@functools.partial(jax.jit, static_argnames=("dims", "do_res"))
def dense_network_pallas(x, ctxt, w_slab, b_slab, *, dims, do_res=DO_RES):
    """x: [B, inpt] f32, ctxt: [B, ctxt] f32.

    w_slab: bf16 [n_mats, M_max, K_max] packed weights (row-padded with zeros)
    b_slab: f32  [M_max, n_mats] packed biases (column i = bias of layer i)
    dims:   static tuple of (in_features, out_features) per layer.
    Returns [B, outp] bf16.
    """
    batch, inpt_dim = x.shape
    ctxt_dim = ctxt.shape[1]
    outp = dims[-1][1]

    # Tile choice: as big as possible up to TILE_B_MAX, multiple of 128.
    tile_b = min(TILE_B_MAX, pl.cdiv(batch, 128) * 128)
    b_pad = pl.cdiv(batch, tile_b) * tile_b
    if b_pad != batch:                  # demo batch divides evenly -> no-op
        x = jnp.pad(x, ((0, b_pad - batch), (0, 0)))
        ctxt = jnp.pad(ctxt, ((0, b_pad - batch), (0, 0)))

    grid = (b_pad // tile_b,)

    in_specs = [
        pl.BlockSpec((tile_b, inpt_dim), lambda i: (i, 0)),
        pl.BlockSpec((tile_b, ctxt_dim), lambda i: (i, 0)),
        # constant index_map -> both param slabs fetched once, resident
        pl.BlockSpec(w_slab.shape, lambda i: (0, 0, 0)),
        pl.BlockSpec(b_slab.shape, lambda i: (0, 0)),
    ]
    # lane-dense output: last dim = tile_b (multiple of 128) -> unmasked vst
    out_spec = pl.BlockSpec((outp, tile_b), lambda i: (0, i))

    flops = sum(2 * b_pad * k * m for k, m in dims)
    bytes_accessed = (
        int(x.size) * 4 + int(ctxt.size) * 4
        + int(w_slab.size) * 2 + int(b_slab.size) * 4
        + b_pad * outp * 2
    )

    out_t = pl.pallas_call(
        make_dense_kernel(dims, inpt_dim, ctxt_dim, do_res),
        out_shape=jax.ShapeDtypeStruct((outp, b_pad), jnp.bfloat16),
        grid_spec=pltpu.PrefetchScalarGridSpec(
            num_scalar_prefetch=0,
            grid=grid,
            in_specs=in_specs,
            out_specs=out_spec,
        ),
        compiler_params=pltpu.CompilerParams(
            dimension_semantics=("parallel",),      # batch axis -> v7x 2 TCs
            vmem_limit_bytes=32 * 1024 * 1024,      # safe on v5e/v6e/v7x
        ),
        cost_estimate=pl.CostEstimate(
            flops=flops, transcendentals=0, bytes_accessed=bytes_accessed),
    )(x, ctxt, w_slab, b_slab)

    # Back to the module's [batch, outp] orientation at the model boundary.
    # TODO(synk): if the surrounding model adopts [features, batch] layout,
    # return out_t[:, :batch] directly and drop this transpose fusion.
    return out_t[:, :batch].T


# --------------------------- parameter handling ----------------------------
def init_linear(key, fan_in, fan_out):
    """Deterministic nn.Linear-style init; W stored [out, in] (bf16), b f32."""
    kw, kb = jax.random.split(key)
    bound = 1.0 / np.sqrt(fan_in)
    w = jax.random.uniform(kw, (fan_out, fan_in), jnp.float32, -bound, bound)
    b = jax.random.uniform(kb, (fan_out,), jnp.float32, -bound, bound)
    return w.astype(jnp.bfloat16), b


def build_params(key):
    keys = jax.random.split(key, 1 + (NUM_BLOCKS - 1) + 1)
    params = []
    # input block linear: (INPT+CTXT) -> H
    w, b = init_linear(keys[0], INPT_DIM + CTXT_DIM, HDDN_DIM)
    params += [w, b]
    # hidden blocks: H -> H
    for i in range(NUM_BLOCKS - 1):
        w, b = init_linear(keys[1 + i], HDDN_DIM, HDDN_DIM)
        params += [w, b]
    # output block: H -> OUTP
    w, b = init_linear(keys[-1], HDDN_DIM, OUTP_DIM)
    params += [w, b]
    return tuple(params)


def pack_params(params):
    """Pack (w, b) pairs into one bf16 weight slab + one f32 bias slab.

    Done once, outside the hot path.  Returns (w_slab, b_slab, dims) where
    dims is a static tuple of (in_features, out_features) per layer.
    """
    weights, biases = params[0::2], params[1::2]
    n = len(weights)
    m_max = max(int(w.shape[0]) for w in weights)
    k_max = max(int(w.shape[1]) for w in weights)
    w_slab = np.zeros((n, m_max, k_max), np.float32)
    b_slab = np.zeros((m_max, n), np.float32)
    dims = []
    for i, (w, b) in enumerate(zip(weights, biases)):
        m, k = int(w.shape[0]), int(w.shape[1])
        w_slab[i, :m, :k] = np.asarray(w, dtype=np.float32)
        b_slab[:m, i] = np.asarray(b, dtype=np.float32).reshape(-1)
        dims.append((k, m))
    return (jnp.asarray(w_slab, jnp.bfloat16),
            jnp.asarray(b_slab, jnp.float32),
            tuple(dims))


# --------------------------- pure-JAX reference ----------------------------
def dense_network_ref(x, ctxt, params, do_res=DO_RES):
    """Reference in [batch, features] orientation mirroring the kernel's
    dtype pattern (bf16 matmul inputs, f32 accumulation/elementwise, bf16 out)."""
    weights, biases = params[0::2], params[1::2]
    n = len(weights)
    xin = jnp.concatenate([x, ctxt], axis=-1).astype(jnp.bfloat16)
    h = _lrelu(jnp.dot(xin, weights[0].T, preferred_element_type=jnp.float32)
               + biases[0][None, :])
    for i in range(1, n - 1):
        h_new = _lrelu(jnp.dot(h.astype(jnp.bfloat16), weights[i].T,
                               preferred_element_type=jnp.float32)
                       + biases[i][None, :])
        h = h_new + h if do_res else h_new
    out = (jnp.dot(h.astype(jnp.bfloat16), weights[-1].T,
                   preferred_element_type=jnp.float32) + biases[-1][None, :])
    return out.astype(jnp.bfloat16)


# ---------------------------------- main -----------------------------------
if __name__ == "__main__":
    key = jax.random.PRNGKey(0)
    k_x, k_c, k_p = jax.random.split(key, 3)

    x = jax.random.normal(k_x, (BATCH, INPT_DIM), jnp.float32)
    ctxt = jax.random.normal(k_c, (BATCH, CTXT_DIM), jnp.float32)
    params = build_params(k_p)
    w_slab, b_slab, dims = pack_params(params)

    out = dense_network_pallas(x, ctxt, w_slab, b_slab, dims=dims, do_res=DO_RES)
    out = jax.block_until_ready(out)

    ref = dense_network_ref(x, ctxt, params, do_res=DO_RES)
    # Both paths use identical bf16 weights/inputs with f32 accumulation and a
    # final bf16 cast; tolerance covers bf16 rounding + accumulation-order
    # differences (kernel computes W@X with a split input contraction).
    np.testing.assert_allclose(np.asarray(out, np.float32),
                               np.asarray(ref, np.float32),
                               rtol=3e-2, atol=3e-2)

    print("KERNEL_OK")
</pallas_src>

<mosaic_0001>
module attributes {stable_mosaic.version = 11 : i64} {
  func.func @kernel(%arg0: i32, %arg1: memref<512x8xf32, #tpu.memory_space<vmem>>, %arg2: memref<512x4xf32, #tpu.memory_space<vmem>>, %arg3: memref<4x32x32xbf16, #tpu.memory_space<vmem>>, %arg4: memref<32x4xf32, #tpu.memory_space<vmem>>, %arg5: memref<8x512xbf16, #tpu.memory_space<vmem>>) attributes {dimension_semantics = [#tpu.dimension_semantics<parallel>], iteration_bounds = array<i64: 4>, scalar_prefetch = 0 : i64, scratch_operands = 0 : i64, tpu.core_type = #tpu.core_type<tc>, window_params = [{transform_indices = @transform_0, window_bounds = array<i64: 512, 8>}, {transform_indices = @transform_1, window_bounds = array<i64: 512, 4>}, {pipeline_mode = #tpu.pipeline_mode<synchronous>, transform_indices = @transform_2, window_bounds = array<i64: 4, 32, 32>}, {pipeline_mode = #tpu.pipeline_mode<synchronous>, transform_indices = @transform_3, window_bounds = array<i64: 32, 4>}, {transform_indices = @transform_4, window_bounds = array<i64: 8, 512>}]} {
    %c0 = arith.constant 0 : index
    %c0_0 = arith.constant 0 : index
    %0 = vector.load %arg1[%c0, %c0_0] : memref<512x8xf32, #tpu.memory_space<vmem>>, vector<512x8xf32>
    %1 = arith.truncf %0 : vector<512x8xf32> to vector<512x8xbf16>
    %c0_1 = arith.constant 0 : index
    %c0_2 = arith.constant 0 : index
    %2 = vector.load %arg2[%c0_1, %c0_2] : memref<512x4xf32, #tpu.memory_space<vmem>>, vector<512x4xf32>
    %3 = arith.truncf %2 : vector<512x4xf32> to vector<512x4xbf16>
    %c0_3 = arith.constant 0 : index
    %c0_4 = arith.constant 0 : index
    %4 = vector.load %arg4[%c0_3, %c0_4] : memref<32x4xf32, #tpu.memory_space<vmem>>, vector<32x4xf32>
    %c0_5 = arith.constant 0 : index
    %c0_6 = arith.constant 0 : index
    %c0_7 = arith.constant 0 : index
    %5 = vector.load %arg3[%c0_5, %c0_6, %c0_7] : memref<4x32x32xbf16, #tpu.memory_space<vmem>>, vector<1x32x32xbf16>
    %6 = vector.shape_cast %5 : vector<1x32x32xbf16> to vector<32x32xbf16>
    %7 = vector.extract_strided_slice %6 {offsets = [0, 0], sizes = [32, 8], strides = [1, 1]} : vector<32x32xbf16> to vector<32x8xbf16>
    "tpu.trace_start"() <{level = 10 : i32, message = "mk,tk->mt"}> : () -> ()
    %cst = arith.constant dense<0.000000e+00> : vector<32x512xf32>
    %8 = tpu.matmul %7, %1, %cst {dimension_numbers = #tpu.dot_dimension_numbers<[1], [1], [0], [0], [0, 0, 1, 0], [], []>} : vector<32x8xbf16>, vector<512x8xbf16>, vector<32x512xf32> -> vector<32x512xf32>
    "tpu.trace_stop"() : () -> ()
    %9 = vector.extract_strided_slice %6 {offsets = [0, 8], sizes = [32, 4], strides = [1, 1]} : vector<32x32xbf16> to vector<32x4xbf16>
    "tpu.trace_start"() <{level = 10 : i32, message = "mk,tk->mt"}> : () -> ()
    %cst_8 = arith.constant dense<0.000000e+00> : vector<32x512xf32>
    %10 = tpu.matmul %9, %3, %cst_8 {dimension_numbers = #tpu.dot_dimension_numbers<[1], [1], [0], [0], [0, 0, 1, 0], [], []>} : vector<32x4xbf16>, vector<512x4xbf16>, vector<32x512xf32> -> vector<32x512xf32>
    "tpu.trace_stop"() : () -> ()
    %11 = arith.addf %8, %10 : vector<32x512xf32>
    %12 = vector.extract_strided_slice %4 {offsets = [0, 0], sizes = [32, 1], strides = [1, 1]} : vector<32x4xf32> to vector<32x1xf32>
    %13 = vector.broadcast %12 : vector<32x1xf32> to vector<32x512xf32>
    %14 = arith.addf %11, %13 : vector<32x512xf32>
    %cst_9 = arith.constant 0.000000e+00 : f32
    %15 = vector.broadcast %cst_9 : f32 to vector<32x512xf32>
    %16 = arith.cmpf ogt, %14, %15 : vector<32x512xf32>
    %cst_10 = arith.constant 0.00999999977 : f32
    %17 = vector.broadcast %cst_10 : f32 to vector<32x512xf32>
    %18 = arith.mulf %17, %14 : vector<32x512xf32>
    %19 = arith.select %16, %14, %18 : vector<32x512xi1>, vector<32x512xf32>
    %c1 = arith.constant 1 : index
    %c0_11 = arith.constant 0 : index
    %c0_12 = arith.constant 0 : index
    %20 = vector.load %arg3[%c1, %c0_11, %c0_12] : memref<4x32x32xbf16, #tpu.memory_space<vmem>>, vector<1x32x32xbf16>
    %21 = vector.shape_cast %20 : vector<1x32x32xbf16> to vector<32x32xbf16>
    %22 = arith.truncf %19 : vector<32x512xf32> to vector<32x512xbf16>
    %cst_13 = arith.constant dense<0.000000e+00> : vector<32x512xf32>
    %23 = tpu.matmul %21, %22, %cst_13 {dimension_numbers = #tpu.dot_dimension_numbers<[1], [0], [0], [1], [0, 0, 1, 1], [], []>} : vector<32x32xbf16>, vector<32x512xbf16>, vector<32x512xf32> -> vector<32x512xf32>
    %24 = vector.extract_strided_slice %4 {offsets = [0, 1], sizes = [32, 1], strides = [1, 1]} : vector<32x4xf32> to vector<32x1xf32>
    %25 = vector.broadcast %24 : vector<32x1xf32> to vector<32x512xf32>
    %26 = arith.addf %23, %25 : vector<32x512xf32>
    %cst_14 = arith.constant 0.000000e+00 : f32
    %27 = vector.broadcast %cst_14 : f32 to vector<32x512xf32>
    %28 = arith.cmpf ogt, %26, %27 : vector<32x512xf32>
    %cst_15 = arith.constant 0.00999999977 : f32
    %29 = vector.broadcast %cst_15 : f32 to vector<32x512xf32>
    %30 = arith.mulf %29, %26 : vector<32x512xf32>
    %31 = arith.select %28, %26, %30 : vector<32x512xi1>, vector<32x512xf32>
    %32 = arith.addf %31, %19 : vector<32x512xf32>
    %c2 = arith.constant 2 : index
    %c0_16 = arith.constant 0 : index
    %c0_17 = arith.constant 0 : index
    %33 = vector.load %arg3[%c2, %c0_16, %c0_17] : memref<4x32x32xbf16, #tpu.memory_space<vmem>>, vector<1x32x32xbf16>
    %34 = vector.shape_cast %33 : vector<1x32x32xbf16> to vector<32x32xbf16>
    %35 = arith.truncf %32 : vector<32x512xf32> to vector<32x512xbf16>
    %cst_18 = arith.constant dense<0.000000e+00> : vector<32x512xf32>
    %36 = tpu.matmul %34, %35, %cst_18 {dimension_numbers = #tpu.dot_dimension_numbers<[1], [0], [0], [1], [0, 0, 1, 1], [], []>} : vector<32x32xbf16>, vector<32x512xbf16>, vector<32x512xf32> -> vector<32x512xf32>
    %37 = vector.extract_strided_slice %4 {offsets = [0, 2], sizes = [32, 1], strides = [1, 1]} : vector<32x4xf32> to vector<32x1xf32>
    %38 = vector.broadcast %37 : vector<32x1xf32> to vector<32x512xf32>
    %39 = arith.addf %36, %38 : vector<32x512xf32>
    %cst_19 = arith.constant 0.000000e+00 : f32
    %40 = vector.broadcast %cst_19 : f32 to vector<32x512xf32>
    %41 = arith.cmpf ogt, %39, %40 : vector<32x512xf32>
    %cst_20 = arith.constant 0.00999999977 : f32
    %42 = vector.broadcast %cst_20 : f32 to vector<32x512xf32>
    %43 = arith.mulf %42, %39 : vector<32x512xf32>
    %44 = arith.select %41, %39, %43 : vector<32x512xi1>, vector<32x512xf32>
    %45 = arith.addf %44, %32 : vector<32x512xf32>
    %c3 = arith.constant 3 : index
    %c0_21 = arith.constant 0 : index
    %c0_22 = arith.constant 0 : index
    %46 = vector.load %arg3[%c3, %c0_21, %c0_22] : memref<4x32x32xbf16, #tpu.memory_space<vmem>>, vector<1x32x32xbf16>
    %47 = vector.shape_cast %46 : vector<1x32x32xbf16> to vector<32x32xbf16>
    %48 = vector.extract_strided_slice %47 {offsets = [0, 0], sizes = [8, 32], strides = [1, 1]} : vector<32x32xbf16> to vector<8x32xbf16>
    %49 = arith.truncf %45 : vector<32x512xf32> to vector<32x512xbf16>
    %cst_23 = arith.constant dense<0.000000e+00> : vector<8x512xf32>
    %50 = tpu.matmul %48, %49, %cst_23 {dimension_numbers = #tpu.dot_dimension_numbers<[1], [0], [0], [1], [0, 0, 1, 1], [], []>} : vector<8x32xbf16>, vector<32x512xbf16>, vector<8x512xf32> -> vector<8x512xf32>
    %51 = vector.extract_strided_slice %4 {offsets = [0, 3], sizes = [8, 1], strides = [1, 1]} : vector<32x4xf32> to vector<8x1xf32>
    %52 = vector.broadcast %51 : vector<8x1xf32> to vector<8x512xf32>
    %53 = arith.addf %50, %52 : vector<8x512xf32>
    %54 = arith.truncf %53 : vector<8x512xf32> to vector<8x512xbf16>
    %c0_24 = arith.constant 0 : index
    %c0_25 = arith.constant 0 : index
    %55 = vector.load %arg5[%c0_24, %c0_25] : memref<8x512xbf16, #tpu.memory_space<vmem>>, vector<8x512xbf16>
    tpu.vector_store %arg5[%c0_24, %c0_25], %54 {strides = array<i32>} : memref<8x512xbf16, #tpu.memory_space<vmem>>, vector<8x512xbf16>,
    return
  }
  func.func @transform_0(%arg0: i32) -> (i32, i32) {
    %c0_i32 = arith.constant 0 : i32
    %c0_i32_0 = arith.constant 0 : i32
    return %arg0, %c0_i32 : i32, i32
  }
  func.func @transform_1(%arg0: i32) -> (i32, i32) {
    %c0_i32 = arith.constant 0 : i32
    %c0_i32_0 = arith.constant 0 : i32
    return %arg0, %c0_i32 : i32, i32
  }
  func.func @transform_2(%arg0: i32) -> (i32, i32, i32) {
    %c0_i32 = arith.constant 0 : i32
    %c0_i32_0 = arith.constant 0 : i32
    %c0_i32_1 = arith.constant 0 : i32
    %c0_i32_2 = arith.constant 0 : i32
    return %c0_i32, %c0_i32_0, %c0_i32_1 : i32, i32, i32
  }
  func.func @transform_3(%arg0: i32) -> (i32, i32) {
    %c0_i32 = arith.constant 0 : i32
    %c0_i32_0 = arith.constant 0 : i32
    %c0_i32_1 = arith.constant 0 : i32
    return %c0_i32, %c0_i32_0 : i32, i32
  }
  func.func @transform_4(%arg0: i32) -> (i32, i32) {
    %c0_i32 = arith.constant 0 : i32
    %c0_i32_0 = arith.constant 0 : i32
    return %c0_i32, %arg0 : i32, i32
  }
}

</mosaic_0001>

<bundles_post_ra>
// kernel: dense_network_pallas.1
= control target key start
LH: loop header
LB: loop body
LE: loop exit
PB: predicated region body
PF: predicated region fallthrough
CT: control target
= control target key end

     0   :  { %9 = vsyncpa [#allocation3], 0  ;;  %s2471_s0 = inlined_call_operand.vmem [shape: f32[2048,8], index: 0, kind: input, shape index: {}]   ;;  %s2472_s1 = inlined_call_operand.vmem [shape: f32[2048,4], index: 1, kind: input, shape index: {}]   ;;  %s2473_s2 = inlined_call_operand.vmem [shape: bf16[4,32,32], index: 2, kind: input, shape index: {}]   ;;  %s2474_s3 = inlined_call_operand.vmem [shape: f32[32,4], index: 3, kind: input, shape index: {}]   ;;  %s2475_s4 = inlined_call_operand.hbm [shape: bf16[8,2048], index: 4, kind: output, shape index: {}]  }
   0x1   :  { %11 = vsyncpa [#allocation3 + $0x1], 0  ;;  %s1905_s15 = smov 0   ;;  %s1907_s16 = smov 0  }
   0x2   :  { %s1909_s17 = smov 0   ;;  %s1911_s18 = smov 0  }
   0x3 LB: > { %s1926_s19 = sadd.s32 4294967295, %s1872_s18   ;;  %s1572_s20 = sadd.s32 4294967294, %s1872_s18   ;;  %s1872_s18 = sphi %s1911_s18, %s2481_s18   ;;  %s1868_s17 = sphi %s1909_s17, %s2480_s17   ;;  %s1864_s16 = sphi %s1907_s16, %s2479_s16   ;;  %s1860_s15 = sphi %s1905_s15, %s2478_s15  }
   0x4   : > { %s1930_s21 = sadd.s32 1, %s1872_s18   ;;  %s118_s22 = sadd.s32 1, %s1868_s17 }
   0x5   : > { %s115_s23 = ssub.s32 %s1872_s18, %s1930_s21  ;;  %p128_p0 = scmp.ne.s32.totalorder %s1868_s17, %s1864_s16 }
   0x6   : > { %p116_p1 = scmp.eq.s32.totalorder %s115_s23, 0  ;;  %p129_p2 = scmp.eq.s32.totalorder %s1926_s19, 3 }
   0x7   : > { %p134_p3 = scmp.ne.s32.totalorder %s1864_s16, %s1860_s15  ;;  %p135_p4 = scmp.eq.s32.totalorder %s1572_s20, 3 }
   0x8   : > { %s1941_s24 = scalar_select %p116_p1, %s1868_s17, %s118_s22  }
   0x9   : > { %p1943_p5 = por %p129_p2, %p128_p0  ;;  %p1947_p6 = por %p135_p4, %p134_p3 }
   0xa   : > { %p1575_p7 = scmp.ge.s32.totalorder %s1872_s18, 1  ;;  %p177_p8 = scmp.lt.s32.totalorder %s1872_s18, 5 }
   0xc   : > { %p178_p9 = pnand %p1575_p7, %p177_p8 }
   0xd   : > { %v1956_v0 = vld [vmem:[%s2473_s2] sm:$0xff] (!%p178_p9)   ;;  %s1577_s29 = sshll.u32 (!%p178_p9), %s1926_s19, 6  ;;  %s1874_s30 = smov (!%p178_p9), 120   ;;  %v1963_v1 = vld [vmem:[%s2473_s2 + $0x8] sm:$0xff] (!%p178_p9)   ;;  %vm436_vm0 = vcmask (!%p178_p9), 31744   ;;  %vm645_vm1 = vcmask (!%p178_p9), 64512  }
   0xe   : > { %181 = sbr.rel (%p178_p9) target bundleno = 1144 (0x478), region = 36  ;;  %432 = vrot.lane.b32.xlu0 (!%p178_p9), %v1956_v0, %s1874_s30  ;;  %p209_p10 = scmp.lt.s32.totalorder (!%p178_p9), %s1577_s29, 255 }
   0xf   : > { %s205_s20 = sand.u32 (!%p178_p9), 1, %s1864_s16   ;;  %s1623_s23 = sshll.u32 (!%p178_p9), %s1926_s19, 8 }
  0x10   : > { %s1576_s22 = sshll.u32 (!%p178_p9), %s205_s20, 4  ;;  %s2429_s5 = scalar_lea.hbm (!%p178_p9), %s2475_s4, %s1623_s23 }
  0x11   : > { %s207_s27 = scalar_lea.vmem (!%p178_p9), [#allocation2], %s1576_s22  ;;  %s1487_s19 = scalar_lea.sflag (!%p178_p9), [#allocation3], %s205_s20 }
  0x12   : > { %434 = vrot.lane.b32.xlu0 (!%p178_p9), %v1963_v1, %s1874_s30  ;;  %s1501_s28 = sshll.u32 (!%p178_p9), %s207_s27, 4  ;;  %s2431_s28 = int_to_ptr.vmem [resolvable:$true] %s1501_s28 }
  0x13   : > { %s1810_s6 = scalar_lea.vmem (!%p178_p9), %s2431_s28, 256 }
  0x14   : > { %p1811_p11 = scmp.ne.s32.totalorder (!%p178_p9), %s2431_s28, %s1810_s6 }
  0x15   : > { %s2483_s29 = smov (!%p209_p10, %s1577_s29), 255 }
  0x16   : > { %s1578_s7 = sshll.u32 %s2483_s29, 3  ;;  %p1812_p12 = pnand %p1811_p11, %p1943_p5 }
  0x17   : > { %s1974_s10 = scalar_lea.vmem %s2472_s1, %s1578_s7  ;;  %s2071_s13 = scalar_lea.vmem %s2471_s0, %s1578_s7 }
  0x18   : > { %v334_v2 = vld [vmem:[%s1974_s10 + $0x80] sm:$0xff]  ;;  %v335_v3 = vld [vmem:[%s1974_s10 + $0x88] sm:$0xff]  ;;  %v336_v13 = vld [vmem:[%s1974_s10 + $0x90] sm:$0xff]  ;;  %p1813_p13 = pneg %p1812_p12  ;;  %s1879_s7 = smov [#allocation2]  }
  0x19   : > { %v366_v4 = vld [vmem:[%s1974_s10 + $0x180] sm:$0xff]  ;;  %v390_v5 = vpack.c.bf16 %v335_v3, %v334_v2  ;;  %v367_v6 = vld [vmem:[%s1974_s10 + $0x188] sm:$0xff]  ;;  %v337_v15 = vld [vmem:[%s1974_s10 + $0x98] sm:$0xff]  ;;  %s1814_s8 = sshll.u32 %s1879_s7, 4  ;;  %s1815_s8 = int_to_ptr.vmem [resolvable:$false] %s1814_s8 }
  0x1a   : > { %v318_v7 = vld [vmem:[%s1974_s10] sm:$0xff]  ;;  %v319_v8 = vld [vmem:[%s1974_s10 + $0x8] sm:$0xff]  ;;  %v406_v9 = vpack.c.bf16 %v367_v6, %v366_v4  ;;  %v368_v16 = vld [vmem:[%s1974_s10 + $0x190] sm:$0xff]  ;;  %v391_v19 = vpack.c.bf16 %v337_v15, %v336_v13  ;;  %s1816_s9 = scalar_lea.vmem %s1815_s8, 512  ;;  %p1817_p0 = scmp.lt.s32.totalorder %s2431_s28, %s1815_s8 }
  0x1b   : > { %v382_v10 = vpack.c.bf16 %v319_v8, %v318_v7  ;;  %v350_v11 = vld [vmem:[%s1974_s10 + $0x100] sm:$0xff]  ;;  %v351_v12 = vld [vmem:[%s1974_s10 + $0x108] sm:$0xff]  ;;  %1720 = vmatprep.subr.msk.bf16.mxu0 %vm436_vm0, %v390_v5  ;;  %v369_v17 = vld [vmem:[%s1974_s10 + $0x198] sm:$0xff]  ;;  %p1818_p1 = scmp.lt.s32.totalorder %s1816_s9, %s1810_s6 }
  0x1c   : > { %v398_v14 = vpack.c.bf16 %v351_v12, %v350_v11  ;;  %1728 = vmatprep.subr.msk.bf16.mxu1 %vm436_vm0, %v406_v9  ;;  %v407_v20 = vpack.c.bf16 %v369_v17, %v368_v16  ;;  %v320_v21 = vld [vmem:[%s1974_s10 + $0x10] sm:$0xff]  ;;  %v321_v22 = vld [vmem:[%s1974_s10 + $0x18] sm:$0xff]  ;;  %v338_v28 = vld [vmem:[%s1974_s10 + $0xa0] sm:$0xff] }
  0x1d   : > { %v444_v18 = vsel %vm436_vm0, %v382_v10, 0  ;;  %v352_v23 = vld [vmem:[%s1974_s10 + $0x110] sm:$0xff]  ;;  %v353_v25 = vld [vmem:[%s1974_s10 + $0x118] sm:$0xff]  ;;  %v383_v26 = vpack.c.bf16 %v321_v22, %v320_v21  ;;  %v339_v29 = vld [vmem:[%s1974_s10 + $0xa8] sm:$0xff]  ;;  %p1819_p2 = por %p1818_p1, %p1817_p0 }
  0x1e   : > { %1625 = vmatpush3.bf16.xpose.msra.mxu0 %v444_v18  ;;  %v492_v24 = vsel %vm436_vm0, %v398_v14, 0  ;;  %v399_v27 = vpack.c.bf16 %v353_v25, %v352_v23  ;;  %v370_v30 = vld [vmem:[%s1974_s10 + $0x1a0] sm:$0xff]  ;;  %v371_v31 = vld [vmem:[%s1974_s10 + $0x1a8] sm:$0xff]  ;;  %v392_v33 = vpack.c.bf16 %v339_v29, %v338_v28  ;;  %v340_v42 = vld [vmem:[%s1974_s10 + $0xb0] sm:$0xff] }
  0x1f   : > { %1645 = vmatpush3.bf16.xpose.msra.mxu1 %v492_v24  ;;  %1721 = vmatprep.subr.msk.bf16.mxu0 %vm436_vm0, %v391_v19  ;;  %v447_v32 = vsel %vm436_vm0, %v383_v26, 0  ;;  %v408_v35 = vpack.c.bf16 %v371_v31, %v370_v30  ;;  %v322_v36 = vld [vmem:[%s1974_s10 + $0x20] sm:$0xff]  ;;  %v323_v37 = vld [vmem:[%s1974_s10 + $0x28] sm:$0xff]  ;;  %v341_v43 = vld [vmem:[%s1974_s10 + $0xb8] sm:$0xff]  ;;  %p1820_p3 = pnand %p1819_p2, %p1813_p13 }
  0x20   : > { %1729 = vmatprep.subr.msk.bf16.mxu1 %vm436_vm0, %v407_v20  ;;  %v495_v34 = vsel %vm436_vm0, %v399_v27, 0  ;;  %v354_v38 = vld [vmem:[%s1974_s10 + $0x120] sm:$0xff]  ;;  %v355_v39 = vld [vmem:[%s1974_s10 + $0x128] sm:$0xff]  ;;  %v384_v40 = vpack.c.bf16 %v323_v37, %v322_v36  ;;  %v372_v44 = vld [vmem:[%s1974_s10 + $0x1b0] sm:$0xff]  ;;  %v393_v47 = vpack.c.bf16 %v341_v43, %v340_v42 }
  0x21   : > { %v400_v41 = vpack.c.bf16 %v355_v39, %v354_v38  ;;  %v373_v45 = vld [vmem:[%s1974_s10 + $0x1b8] sm:$0xff]  ;;  %v324_v50 = vld [vmem:[%s1974_s10 + $0x30] sm:$0xff]  ;;  %v342_v56 = vld [vmem:[%s1974_s10 + $0xc0] sm:$0xff] }
  0x22   : > { %v450_v46 = vsel %vm436_vm0, %v384_v40, 0  ;;  %v409_v49 = vpack.c.bf16 %v373_v45, %v372_v44  ;;  %v325_v51 = vld [vmem:[%s1974_s10 + $0x38] sm:$0xff]  ;;  %v356_v52 = vld [vmem:[%s1974_s10 + $0x130] sm:$0xff]  ;;  %v343_v57 = vld [vmem:[%s1974_s10 + $0xc8] sm:$0xff] }
  0x23   : > { %v498_v48 = vsel %vm436_vm0, %v400_v41, 0  ;;  %v357_v53 = vld [vmem:[%s1974_s10 + $0x138] sm:$0xff]  ;;  %v385_v54 = vpack.c.bf16 %v325_v51, %v324_v50  ;;  %v374_v58 = vld [vmem:[%s1974_s10 + $0x1c0] sm:$0xff]  ;;  %v375_v59 = vld [vmem:[%s1974_s10 + $0x1c8] sm:$0xff]  ;;  %v394_v61 = vpack.c.bf16 %v343_v57, %v342_v56 }
  0x24   : > { %v401_v55 = vpack.c.bf16 %v357_v53, %v356_v52  ;;  %v410_v63 = vpack.c.bf16 %v375_v59, %v374_v58  ;;  %v326_v2 = vld [vmem:[%s1974_s10 + $0x40] sm:$0xff]  ;;  %v327_v3 = vld [vmem:[%s1974_s10 + $0x48] sm:$0xff]  ;;  %v344_v8 = vld [vmem:[%s1974_s10 + $0xd0] sm:$0xff]  ;;  %v1875_v53 = vmov 0  }
  0x25   : > { %v453_v60 = vsel %vm436_vm0, %v385_v54, 0  ;;  %v358_v4 = vld [vmem:[%s1974_s10 + $0x140] sm:$0xff]  ;;  %v359_v5 = vld [vmem:[%s1974_s10 + $0x148] sm:$0xff]  ;;  %v386_v6 = vpack.c.bf16 %v327_v3, %v326_v2  ;;  %v345_v9 = vld [vmem:[%s1974_s10 + $0xd8] sm:$0xff]  ;;  %1796 = vset.pattern.permute.xlu1 %v1875_v53  ;;  %1797 = vset.pattern.permute.xlu0 %v1875_v53 }
  0x26   : > { %1627 = vmatpush3.bf16.xpose.msra.mxu0 %v447_v32  ;;  %v501_v62 = vsel %vm436_vm0, %v401_v55, 0  ;;  %v402_v7 = vpack.c.bf16 %v359_v5, %v358_v4  ;;  %v376_v10 = vld [vmem:[%s1974_s10 + $0x1d0] sm:$0xff]  ;;  %v377_v11 = vld [vmem:[%s1974_s10 + $0x1d8] sm:$0xff]  ;;  %v395_v13 = vpack.c.bf16 %v345_v9, %v344_v8  ;;  %v346_v22 = vld [vmem:[%s1974_s10 + $0xe0] sm:$0xff] }
  0x27   : > { %1647 = vmatpush3.bf16.xpose.msra.mxu1 %v495_v34  ;;  %1722 = vmatprep.subr.msk.bf16.mxu0 %vm436_vm0, %v392_v33  ;;  %v456_v12 = vsel %vm436_vm0, %v386_v6, 0  ;;  %v411_v15 = vpack.c.bf16 %v377_v11, %v376_v10  ;;  %v328_v16 = vld [vmem:[%s1974_s10 + $0x50] sm:$0xff]  ;;  %v329_v17 = vld [vmem:[%s1974_s10 + $0x58] sm:$0xff]  ;;  %v347_v23 = vld [vmem:[%s1974_s10 + $0xe8] sm:$0xff] }
  0x28   : > { %1730 = vmatprep.subr.msk.bf16.mxu1 %vm436_vm0, %v408_v35  ;;  %v504_v14 = vsel %vm436_vm0, %v402_v7, 0  ;;  %v360_v18 = vld [vmem:[%s1974_s10 + $0x150] sm:$0xff]  ;;  %v361_v19 = vld [vmem:[%s1974_s10 + $0x158] sm:$0xff]  ;;  %v387_v20 = vpack.c.bf16 %v329_v17, %v328_v16  ;;  %v378_v24 = vld [vmem:[%s1974_s10 + $0x1e0] sm:$0xff]  ;;  %v396_v27 = vpack.c.bf16 %v347_v23, %v346_v22 }
  0x29   : > { %v403_v21 = vpack.c.bf16 %v361_v19, %v360_v18  ;;  %v379_v25 = vld [vmem:[%s1974_s10 + $0x1e8] sm:$0xff]  ;;  %v330_v30 = vld [vmem:[%s1974_s10 + $0x60] sm:$0xff]  ;;  %v348_v36 = vld [vmem:[%s1974_s10 + $0xf0] sm:$0xff] }
  0x2a   : > { %v459_v26 = vsel %vm436_vm0, %v387_v20, 0  ;;  %v412_v29 = vpack.c.bf16 %v379_v25, %v378_v24  ;;  %v331_v31 = vld [vmem:[%s1974_s10 + $0x68] sm:$0xff]  ;;  %v362_v32 = vld [vmem:[%s1974_s10 + $0x160] sm:$0xff]  ;;  %v349_v37 = vld [vmem:[%s1974_s10 + $0xf8] sm:$0xff] }
  0x2b   : > { %v507_v28 = vsel %vm436_vm0, %v403_v21, 0  ;;  %v363_v33 = vld [vmem:[%s1974_s10 + $0x168] sm:$0xff]  ;;  %v388_v34 = vpack.c.bf16 %v331_v31, %v330_v30  ;;  %v380_v38 = vld [vmem:[%s1974_s10 + $0x1f0] sm:$0xff]  ;;  %v381_v39 = vld [vmem:[%s1974_s10 + $0x1f8] sm:$0xff]  ;;  %v397_v41 = vpack.c.bf16 %v349_v37, %v348_v36 }
  0x2c   : > { %v404_v35 = vpack.c.bf16 %v363_v33, %v362_v32  ;;  %v413_v43 = vpack.c.bf16 %v381_v39, %v380_v38  ;;  %v332_v44 = vld [vmem:[%s1974_s10 + $0x70] sm:$0xff]  ;;  %v333_v45 = vld [vmem:[%s1974_s10 + $0x78] sm:$0xff]  ;;  %v238_v51 = vld [vmem:[%s2071_s13 + $0x80] sm:$0xff] }
  0x2d   : > { %v462_v40 = vsel %vm436_vm0, %v388_v34, 0  ;;  %v239_v52 = vld [vmem:[%s2071_s13 + $0x88] sm:$0xff]  ;;  %v2088_v54 = vld [vmem:[%s2474_s3 + $0x10] sm:$0xff]  ;;  %v270_v55 = vld [vmem:[%s2071_s13 + $0x180] sm:$0xff] }
  0x2e   : > { %1629 = vmatpush3.bf16.xpose.msra.mxu0 %v450_v46  ;;  %v510_v42 = vsel %vm436_vm0, %v404_v35, 0  ;;  %v364_v46 = vld [vmem:[%s1974_s10 + $0x170] sm:$0xff]  ;;  %v271_v56 = vld [vmem:[%s2071_s13 + $0x188] sm:$0xff]  ;;  %866 = vperm.xlu0 %1797, %v2088_v54   ;;  %v294_v59 = vpack.c.bf16 %v239_v52, %v238_v51  ;;  %v254_v3 = vld [vmem:[%s2071_s13 + $0x100] sm:$0xff] }
  0x2f   : > { %1649 = vmatpush3.bf16.xpose.msra.mxu1 %v498_v48  ;;  %1723 = vmatprep.subr.msk.bf16.mxu0 %vm436_vm0, %v393_v47  ;;  %v365_v47 = vld [vmem:[%s1974_s10 + $0x178] sm:$0xff]  ;;  %v389_v48 = vpack.c.bf16 %v333_v45, %v332_v44  ;;  %v2097_v57 = vld [vmem:[%s2474_s3 + $0x8] sm:$0xff]  ;;  %v240_v7 = vld [vmem:[%s2071_s13 + $0x90] sm:$0xff] }
  0x30   : > { %1731 = vmatprep.subr.msk.bf16.mxu1 %vm436_vm0, %v409_v49  ;;  %v2079_v49 = vld [vmem:[%s2474_s3] sm:$0xff]  ;;  %v405_v50 = vpack.c.bf16 %v365_v47, %v364_v46  ;;  %v223_v2 = vld [vmem:[%s2071_s13 + $0x8] sm:$0xff]  ;;  %v241_v8 = vld [vmem:[%s2071_s13 + $0x98] sm:$0xff] }
  0x31   : > { %856 = vperm.xlu1 %1796, %v2079_v49   ;;  %v465_v58 = vsel %vm436_vm0, %v389_v48, 0  ;;  %v255_v4 = vld [vmem:[%s2071_s13 + $0x108] sm:$0xff]  ;;  %v272_v9 = vld [vmem:[%s2071_s13 + $0x190] sm:$0xff]  ;;  %v273_v10 = vld [vmem:[%s2071_s13 + $0x198] sm:$0xff] }
  0x32   : > { %v302_v6 = vpack.c.bf16 %v255_v4, %v254_v3  ;;  %v224_v16 = vld [vmem:[%s2071_s13 + $0x10] sm:$0xff]  ;;  %v225_v17 = vld [vmem:[%s2071_s13 + $0x18] sm:$0xff]  ;;  %v242_v22 = vld [vmem:[%s2071_s13 + $0xa0] sm:$0xff] }
  0x33   : > { %v256_v18 = vld [vmem:[%s2071_s13 + $0x110] sm:$0xff]  ;;  %v257_v19 = vld [vmem:[%s2071_s13 + $0x118] sm:$0xff]  ;;  %v287_v20 = vpack.c.bf16 %v225_v17, %v224_v16  ;;  %v243_v24 = vld [vmem:[%s2071_s13 + $0xa8] sm:$0xff] }
  0x34   : > { %v303_v21 = vpack.c.bf16 %v257_v19, %v256_v18  ;;  %v274_v25 = vld [vmem:[%s2071_s13 + $0x1a0] sm:$0xff]  ;;  %v227_v32 = vld [vmem:[%s2071_s13 + $0x28] sm:$0xff]  ;;  %v244_v37 = vld [vmem:[%s2071_s13 + $0xb0] sm:$0xff] }
  0x35   : > { %861 = vperm.xlu1 %1796, %v2097_v57   ;;  %v226_v31 = vld [vmem:[%s2071_s13 + $0x20] sm:$0xff]  ;;  %v259_v34 = vld [vmem:[%s2071_s13 + $0x128] sm:$0xff]  ;;  %v245_v38 = vld [vmem:[%s2071_s13 + $0xb8] sm:$0xff] }
  0x36   : > { %1631 = vmatpush3.bf16.xpose.msra.mxu0 %v453_v60  ;;  %v513_v60 = vsel %vm436_vm0, %v405_v50, 0  ;;  %v258_v33 = vld [vmem:[%s2071_s13 + $0x120] sm:$0xff]  ;;  %v288_v35 = vpack.c.bf16 %v227_v32, %v226_v31  ;;  %v276_v39 = vld [vmem:[%s2071_s13 + $0x1b0] sm:$0xff]  ;;  %v229_v46 = vld [vmem:[%s2071_s13 + $0x38] sm:$0xff] }
  0x37   : > { %1651 = vmatpush3.bf16.xpose.msra.mxu1 %v501_v62  ;;  %1724 = vmatprep.subr.msk.bf16.mxu0 %vm436_vm0, %v394_v61  ;;  %v310_v61 = vpack.c.bf16 %v271_v56, %v270_v55  ;;  %v2106_v62 = vld [vmem:[%s2474_s3 + $0x18] sm:$0xff]  ;;  %v304_v36 = vpack.c.bf16 %v259_v34, %v258_v33  ;;  %v228_v45 = vld [vmem:[%s2071_s13 + $0x30] sm:$0xff]  ;;  %v246_v52 = vld [vmem:[%s2071_s13 + $0xc0] sm:$0xff] }
  0x38   : > { %1732 = vmatprep.subr.msk.bf16.mxu1 %vm436_vm0, %v410_v63  ;;  %v222_v63 = vld [vmem:[%s2071_s13] sm:$0xff]  ;;  %v260_v47 = vld [vmem:[%s2071_s13 + $0x130] sm:$0xff]  ;;  %v261_v48 = vld [vmem:[%s2071_s13 + $0x138] sm:$0xff]  ;;  %v289_v50 = vpack.c.bf16 %v229_v46, %v228_v45 }
  0x39   : > { %871 = vperm.xlu1 %1796, %v2106_v62   ;;  %v286_v5 = vpack.c.bf16 %v223_v2, %v222_v63  ;;  %v305_v51 = vpack.c.bf16 %v261_v48, %v260_v47  ;;  %v247_v55 = vld [vmem:[%s2071_s13 + $0xc8] sm:$0xff]  ;;  %v278_v56 = vld [vmem:[%s2071_s13 + $0x1c0] sm:$0xff]  ;;  %v232_v16 = vld [vmem:[%s2071_s13 + $0x50] sm:$0xff] }
  0x3a   : > { %v230_v2 = vld [vmem:[%s2071_s13 + $0x40] sm:$0xff]  ;;  %v231_v3 = vld [vmem:[%s2071_s13 + $0x48] sm:$0xff]  ;;  %v233_v17 = vld [vmem:[%s2071_s13 + $0x58] sm:$0xff] }
  0x3b   : > { %v262_v4 = vld [vmem:[%s2071_s13 + $0x140] sm:$0xff]  ;;  %v264_v18 = vld [vmem:[%s2071_s13 + $0x150] sm:$0xff]  ;;  %v265_v19 = vld [vmem:[%s2071_s13 + $0x158] sm:$0xff] }
  0x3c   : > { %v235_v31 = vld [vmem:[%s2071_s13 + $0x68] sm:$0xff]  ;;  %v266_v32 = vld [vmem:[%s2071_s13 + $0x160] sm:$0xff]  ;;  %v237_v45 = vld [vmem:[%s2071_s13 + $0x78] sm:$0xff] }
  0x3d   : > { %v267_v33 = vld [vmem:[%s2071_s13 + $0x168] sm:$0xff]  ;;  %v268_v46 = vld [vmem:[%s2071_s13 + $0x170] sm:$0xff]  ;;  %v269_v47 = vld [vmem:[%s2071_s13 + $0x178] sm:$0xff] }
  0x3e   : > { %1633 = vmatpush3.bf16.xpose.msra.mxu0 %v456_v12  ;;  %v653_v12 = vsel %vm645_vm1, %v286_v5, 0  ;;  %v263_v5 = vld [vmem:[%s2071_s13 + $0x148] sm:$0xff] }
  0x3f   : > { %1653 = vmatpush3.bf16.xpose.msra.mxu1 %v504_v14  ;;  %1725 = vmatprep.subr.msk.bf16.mxu0 %vm436_vm0, %v395_v13  ;;  %v701_v13 = vsel %vm645_vm1, %v302_v6, 0  ;;  %v295_v14 = vpack.c.bf16 %v241_v8, %v240_v7  ;;  %v290_v6 = vpack.c.bf16 %v231_v3, %v230_v2  ;;  %v306_v7 = vpack.c.bf16 %v263_v5, %v262_v4  ;;  %v248_v8 = vld [vmem:[%s2071_s13 + $0xd0] sm:$0xff] }
  0x40   : > { %1733 = vmatprep.subr.msk.bf16.mxu1 %vm436_vm0, %v411_v15  ;;  %v311_v15 = vpack.c.bf16 %v273_v10, %v272_v9  ;;  %v249_v9 = vld [vmem:[%s2071_s13 + $0xd8] sm:$0xff]  ;;  %v280_v10 = vld [vmem:[%s2071_s13 + $0x1d0] sm:$0xff] }
  0x46   : > { %1635 = vmatpush3.bf16.xpose.msra.mxu0 %v459_v26  ;;  %v275_v26 = vld [vmem:[%s2071_s13 + $0x1a8] sm:$0xff] }
  0x47   : > { %1655 = vmatpush3.bf16.xpose.msra.mxu1 %v507_v28  ;;  %1726 = vmatprep.subr.msk.bf16.mxu0 %vm436_vm0, %v396_v27  ;;  %v656_v27 = vsel %vm645_vm1, %v287_v20, 0  ;;  %v704_v28 = vsel %vm645_vm1, %v303_v21, 0  ;;  %v312_v30 = vpack.c.bf16 %v275_v26, %v274_v25  ;;  %v291_v20 = vpack.c.bf16 %v233_v17, %v232_v16  ;;  %v283_v25 = vld [vmem:[%s2071_s13 + $0x1e8] sm:$0xff] }
  0x48   : > { %1734 = vmatprep.subr.msk.bf16.mxu1 %vm436_vm0, %v412_v29  ;;  %v296_v29 = vpack.c.bf16 %v243_v24, %v242_v22  ;;  %v307_v21 = vpack.c.bf16 %v265_v19, %v264_v18  ;;  %v250_v22 = vld [vmem:[%s2071_s13 + $0xe0] sm:$0xff] }
  0x49   : > { %v282_v24 = vld [vmem:[%s2071_s13 + $0x1e0] sm:$0xff]  ;;  %v668_v26 = vsel %vm645_vm1, %v291_v20, 0 }
  0x4e   : > { %1637 = vmatpush3.bf16.xpose.msra.mxu0 %v462_v40  ;;  %v277_v40 = vld [vmem:[%s2071_s13 + $0x1b8] sm:$0xff] }
  0x4f   : > { %1657 = vmatpush3.bf16.xpose.msra.mxu1 %v510_v42  ;;  %1727 = vmatprep.subr.msk.bf16.mxu0 %vm436_vm0, %v397_v41  ;;  %v659_v41 = vsel %vm645_vm1, %v288_v35, 0  ;;  %v707_v42 = vsel %vm645_vm1, %v304_v36, 0  ;;  %v313_v44 = vpack.c.bf16 %v277_v40, %v276_v39  ;;  %v308_v35 = vpack.c.bf16 %v267_v33, %v266_v32  ;;  %v252_v36 = vld [vmem:[%s2071_s13 + $0xf0] sm:$0xff]  ;;  %v285_v39 = vld [vmem:[%s2071_s13 + $0x1f8] sm:$0xff] }
  0x50   : > { %1735 = vmatprep.subr.msk.bf16.mxu1 %vm436_vm0, %v413_v43  ;;  %v297_v43 = vpack.c.bf16 %v245_v38, %v244_v37  ;;  %v253_v37 = vld [vmem:[%s2071_s13 + $0xf8] sm:$0xff]  ;;  %v284_v38 = vld [vmem:[%s2071_s13 + $0x1f0] sm:$0xff] }
  0x56   : > { %1639 = vmatpush3.bf16.xpose.msra.mxu0 %v465_v58  ;;  %v279_v58 = vld [vmem:[%s2071_s13 + $0x1c8] sm:$0xff] }
  0x57   : > { %1659 = vmatpush3.bf16.xpose.msra.mxu1 %v513_v60  ;;  %1736 = vmatprep.subr.msk.bf16.mxu0 %vm645_vm1, %v294_v59  ;;  %v662_v59 = vsel %vm645_vm1, %v289_v50, 0  ;;  %v710_v60 = vsel %vm645_vm1, %v305_v51, 0  ;;  %v314_v63 = vpack.c.bf16 %v279_v58, %v278_v56  ;;  %v309_v50 = vpack.c.bf16 %v269_v47, %v268_v46 }
  0x58   : > { %1744 = vmatprep.subr.msk.bf16.mxu1 %vm645_vm1, %v310_v61  ;;  %v298_v61 = vpack.c.bf16 %v247_v55, %v246_v52  ;;  %v1876_v55 = vmov 1  }
  0x59   : > { %v722_v52 = vsel %vm645_vm1, %v309_v50, 0  ;;  %1798 = vset.pattern.permute.xlu1 %v1876_v55  ;;  %1799 = vset.pattern.permute.xlu0 %v1876_v55 }
  0x5a   : > { %952 = vperm.xlu1 %1798, %v2079_v49   ;;  %956 = vperm.xlu0 %1799, %v2097_v57  }
  0x5e   : > { %960 = vperm.xlu1 %1798, %v2088_v54  }
  0x62   : > { %964 = vperm.xlu1 %1798, %v2106_v62  }
  0x80   : > { %v433_v11 = vpop.permute.xlu0 %432 }
  0x81   : > { %1640 = vmatprep.mubr.msk.bf16.mxu0 %vm436_vm0, %v433_v11  ;;  %1660 = vmatprep.mubr.msk.bf16.mxu1 %vm436_vm0, %v433_v11 }
  0x82   : > { %1641 = vmatmul.mubr.msk.bf16.vlgmr.msra.gmra.mrb[0].mxu0 %vm436_vm0, %v433_v11  ;;  %1661 = vmatmul.mubr.msk.bf16.vlgmr.msra.gmra.mrb[0].mxu1 %vm436_vm0, %v433_v11  ;;  %v281_v11 = vld [vmem:[%s2071_s13 + $0x1d8] sm:$0xff] }
  0x83   : > { %1665 = vmatpush3.bf16.xpose.msra.mxu0 %v653_v12  ;;  %1685 = vmatpush3.bf16.xpose.msra.mxu1 %v701_v13  ;;  %v665_v12 = vsel %vm645_vm1, %v290_v6, 0  ;;  %v713_v13 = vsel %vm645_vm1, %v306_v7, 0 }
  0x84   : > { %1737 = vmatprep.subr.msk.bf16.mxu0 %vm645_vm1, %v295_v14  ;;  %1745 = vmatprep.subr.msk.bf16.mxu1 %vm645_vm1, %v311_v15  ;;  %v435_v23 = vpop.permute.xlu0 %434  ;;  %v299_v14 = vpack.c.bf16 %v249_v9, %v248_v8  ;;  %v315_v15 = vpack.c.bf16 %v281_v11, %v280_v10 }
  0x85   : > { %1642 = vmatprep.mubr.msk.bf16.mxu0 %vm436_vm0, %v435_v23  ;;  %1662 = vmatprep.mubr.msk.bf16.mxu1 %vm436_vm0, %v435_v23 }
  0x8a   : > { %1643 = vmatmul.mubr.msk.bf16.gmra.mrb[4].mxu0 %vm436_vm0, %v435_v23  ;;  %1663 = vmatmul.mubr.msk.bf16.gmra.mrb[4].mxu1 %vm436_vm0, %v435_v23  ;;  %v251_v23 = vld [vmem:[%s2071_s13 + $0xe8] sm:$0xff] }
  0x8b   : > { %1667 = vmatpush3.bf16.xpose.msra.mxu0 %v656_v27  ;;  %1687 = vmatpush3.bf16.xpose.msra.mxu1 %v704_v28  ;;  %v716_v27 = vsel %vm645_vm1, %v307_v21, 0  ;;  %v300_v28 = vpack.c.bf16 %v251_v23, %v250_v22 }
  0x8c   : > { %1738 = vmatprep.subr.msk.bf16.mxu0 %vm645_vm1, %v296_v29  ;;  %1746 = vmatprep.subr.msk.bf16.mxu1 %vm645_vm1, %v312_v30  ;;  %v316_v29 = vpack.c.bf16 %v283_v25, %v282_v24  ;;  %v234_v30 = vld [vmem:[%s2071_s13 + $0x60] sm:$0xff] }
  0x8d   : > { %1680 = vmatprep.mubr.msk.bf16.mxu0 %vm645_vm1, %v1956_v0  ;;  %1700 = vmatprep.mubr.msk.bf16.mxu1 %vm645_vm1, %v1956_v0  ;;  %v292_v34 = vpack.c.bf16 %v235_v31, %v234_v30 }
  0x8f   : > { %v671_v40 = vsel %vm645_vm1, %v292_v34, 0 }
  0x93   : > { %1669 = vmatpush3.bf16.xpose.msra.mxu0 %v659_v41  ;;  %1689 = vmatpush3.bf16.xpose.msra.mxu1 %v707_v42  ;;  %v719_v41 = vsel %vm645_vm1, %v308_v35, 0  ;;  %v301_v42 = vpack.c.bf16 %v253_v37, %v252_v36 }
  0x94   : > { %1739 = vmatprep.subr.msk.bf16.mxu0 %vm645_vm1, %v297_v43  ;;  %1747 = vmatprep.subr.msk.bf16.mxu1 %vm645_vm1, %v313_v44  ;;  %v317_v43 = vpack.c.bf16 %v285_v39, %v284_v38  ;;  %v236_v44 = vld [vmem:[%s2071_s13 + $0x70] sm:$0xff] }
  0x95   : > { %v293_v48 = vpack.c.bf16 %v237_v45, %v236_v44 }
  0x97   : > { %v674_v51 = vsel %vm645_vm1, %v293_v48, 0 }
  0x9b   : > { %1671 = vmatpush3.bf16.xpose.msra.mxu0 %v662_v59  ;;  %1691 = vmatpush3.bf16.xpose.msra.mxu1 %v710_v60 }
  0x9c   : > { %1740 = vmatprep.subr.msk.bf16.mxu0 %vm645_vm1, %v298_v61  ;;  %1748 = vmatprep.subr.msk.bf16.mxu1 %vm645_vm1, %v314_v63 }
  0xa3   : > { %1673 = vmatpush3.bf16.xpose.msra.mxu0 %v665_v12  ;;  %1693 = vmatpush3.bf16.xpose.msra.mxu1 %v713_v13 }
  0xa4   : > { %1741 = vmatprep.subr.msk.bf16.mxu0 %vm645_vm1, %v299_v14  ;;  %1749 = vmatprep.subr.msk.bf16.mxu1 %vm645_vm1, %v315_v15 }
  0xab   : > { %1675 = vmatpush3.bf16.xpose.msra.mxu0 %v668_v26  ;;  %1695 = vmatpush3.bf16.xpose.msra.mxu1 %v716_v27 }
  0xac   : > { %1742 = vmatprep.subr.msk.bf16.mxu0 %vm645_vm1, %v300_v28  ;;  %1750 = vmatprep.subr.msk.bf16.mxu1 %vm645_vm1, %v316_v29 }
  0xad   : > { %v867_v18 = vpop.permute.xlu0 %866 }
  0xb3   : > { %1677 = vmatpush3.bf16.xpose.msra.mxu0 %v671_v40  ;;  %1697 = vmatpush3.bf16.xpose.msra.mxu1 %v719_v41 }
  0xb4   : > { %1743 = vmatprep.subr.msk.bf16.mxu0 %vm645_vm1, %v301_v42  ;;  %1751 = vmatprep.subr.msk.bf16.mxu1 %vm645_vm1, %v317_v43 }
  0xbb   : > { %1679 = vmatpush3.bf16.xpose.msra.mxu0 %v674_v51  ;;  %1699 = vmatpush3.bf16.xpose.msra.mxu1 %v722_v52 }
  0xc2   : > { %1681 = vmatmul.mubr.msk.bf16.vlgmr.msra.gmra.mrb[0].mxu0 %vm645_vm1, %v1956_v0  ;;  %1701 = vmatmul.mubr.msk.bf16.vlgmr.msra.gmra.mrb[0].mxu1 %vm645_vm1, %v1956_v0  ;;  %v857_v0 = vpop.permute.xlu1 %856 }
  0xc3   : > { %1682 = vmatprep.mubr.msk.bf16.mxu0 %vm645_vm1, %v1963_v1  ;;  %1702 = vmatprep.mubr.msk.bf16.mxu1 %vm645_vm1, %v1963_v1 }
  0xc6   : > { %v862_v5 = vpop.permute.xlu1 %861 }
  0xca   : > { %1683 = vmatmul.mubr.msk.bf16.gmra.mrb[4].mxu0 %vm645_vm1, %v1963_v1  ;;  %1703 = vmatmul.mubr.msk.bf16.gmra.mrb[4].mxu1 %vm645_vm1, %v1963_v1  ;;  %v872_v42 = vpop.permute.xlu1 %871 }
  0xcb   : > { %1016 = vmatprep.mubr.bf16.mxu0 %v1875_v53  ;;  %1069 = vmatprep.mubr.bf16.mxu1 %v1875_v53 }
 0x195   : > { %v782_v56 = vpop.f32.mrb[0].mxu0  ;;  %v835_v58 = vpop.f32.mrb[0].mxu1 }
 0x196   : > { %v874_v59 = vadd.f32 %v857_v0, %v782_v56  ;;  %v876_v1 = vadd.f32 %v857_v0, %v835_v58  ;;  %v784_v60 = vpop.f32.mrb[1].mxu0  ;;  %v837_v61 = vpop.f32.mrb[1].mxu1 }
 0x197   : > { %v875_v63 = vadd.f32 %v857_v0, %v784_v60  ;;  %v877_v2 = vadd.f32 %v857_v0, %v837_v61  ;;  %v786_v3 = vpop.f32.mrb[2].mxu0  ;;  %v839_v4 = vpop.f32.mrb[2].mxu1 }
 0x198   : > { %vm890_vm2 = vcmp.gt.f32.partialorder %v874_v59, 0.0  ;;  %v906_v6 = vmul.f32 0.01, %v874_v59  ;;  %vm892_vm3 = vcmp.gt.f32.partialorder %v876_v1, 0.0  ;;  %v908_v7 = vmul.f32 0.01, %v876_v1 }
 0x199   : > { %vm891_vm4 = vcmp.gt.f32.partialorder %v875_v63, 0.0  ;;  %v878_v8 = vadd.f32 %v862_v5, %v786_v3  ;;  %v880_v9 = vadd.f32 %v862_v5, %v839_v4  ;;  %v788_v10 = vpop.f32.mrb[3].mxu0  ;;  %v841_v11 = vpop.f32.mrb[3].mxu1  ;;  %v907_v12 = vmul.f32 0.01, %v875_v63 }
 0x19a   : > { %v909_v13 = vmul.f32 0.01, %v877_v2  ;;  %v879_v14 = vadd.f32 %v862_v5, %v788_v10  ;;  %v881_v15 = vadd.f32 %v862_v5, %v841_v11  ;;  %v2232_v19 = vsel %vm890_vm2, %v874_v59, %v906_v6  ;;  %v1806_v11 = vld [vmem:[%s2473_s2 + $0x10] sm:$0xff]  }
 0x19b   : > { %vm894_vm5 = vcmp.gt.f32.partialorder %v878_v8, 0.0  ;;  %v910_v16 = vmul.f32 0.01, %v878_v8  ;;  %vm896_vm6 = vcmp.gt.f32.partialorder %v880_v9, 0.0  ;;  %v912_v17 = vmul.f32 0.01, %v880_v9 }
 0x19c   : > { %vm893_vm7 = vcmp.gt.f32.partialorder %v877_v2, 0.0  ;;  %v911_v20 = vmul.f32 0.01, %v879_v14  ;;  %v913_v21 = vmul.f32 0.01, %v881_v15  ;;  %vm895_vm8 = vcmp.gt.f32.partialorder %v879_v14, 0.0 }
 0x19d   : > { %v2234_v22 = vsel %vm894_vm5, %v878_v8, %v910_v16  ;;  %v2236_v23 = vsel %vm896_vm6, %v880_v9, %v912_v17  ;;  %vm897_vm9 = vcmp.gt.f32.partialorder %v881_v15, 0.0  ;;  %v792_v24 = vpop.f32.mrb[4].mxu0  ;;  %v845_v25 = vpop.f32.mrb[4].mxu1  ;;  %v2239_v26 = vsel %vm892_vm3, %v876_v1, %v908_v7 }
 0x19e   : > { %v882_v27 = vadd.f32 %v867_v18, %v792_v24  ;;  %v884_v28 = vadd.f32 %v867_v18, %v845_v25  ;;  %v794_v29 = vpop.f32.mrb[5].mxu0  ;;  %v847_v30 = vpop.f32.mrb[5].mxu1  ;;  %v2242_v31 = vsel %vm891_vm4, %v875_v63, %v907_v12  ;;  %v943_v32 = vpack.c.bf16 %v2234_v22, %v2232_v19  ;;  %v1807_v12 = vld [vmem:[%s2473_s2 + $0x18] sm:$0xff]  }
 0x19f   : > { %v883_v33 = vadd.f32 %v867_v18, %v794_v29  ;;  %v885_v34 = vadd.f32 %v867_v18, %v847_v30  ;;  %v796_v35 = vpop.f32.mrb[6].mxu0  ;;  %v849_v36 = vpop.f32.mrb[6].mxu1  ;;  %v2247_v37 = vsel %vm893_vm7, %v877_v2, %v909_v13  ;;  %v945_v38 = vpack.c.bf16 %v2236_v23, %v2239_v26 }
 0x1a0   : > { %v914_v39 = vmul.f32 0.01, %v882_v27  ;;  %v2252_v40 = vsel %vm895_vm8, %v879_v14, %v911_v20  ;;  %v2255_v41 = vsel %vm897_vm9, %v881_v15, %v913_v21  ;;  %vm898_vm10 = vcmp.gt.f32.partialorder %v882_v27, 0.0  ;;  %v798_v48 = vpop.f32.mrb[7].mxu0  ;;  %v851_v50 = vpop.f32.mrb[7].mxu1 }
 0x1a1   : > { %v916_v43 = vmul.f32 0.01, %v884_v28  ;;  %vm899_vm11 = vcmp.gt.f32.partialorder %v883_v33, 0.0  ;;  %v915_v44 = vmul.f32 0.01, %v883_v33  ;;  %vm901_vm12 = vcmp.gt.f32.partialorder %v885_v34, 0.0  ;;  %v953_v14 = vpop.permute.xlu1 %952  ;;  %v957_v16 = vpop.permute.xlu0 %956 }
 0x1a2   : > { %v917_v45 = vmul.f32 0.01, %v885_v34  ;;  %v886_v46 = vadd.f32 %v872_v42, %v796_v35  ;;  %v888_v47 = vadd.f32 %v872_v42, %v849_v36  ;;  %v887_v51 = vadd.f32 %v872_v42, %v798_v48 }
 0x1a3   : > { %v889_v52 = vadd.f32 %v872_v42, %v851_v50  ;;  %v944_v55 = vpack.c.bf16 %v2252_v40, %v2242_v31  ;;  %v946_v0 = vpack.c.bf16 %v2255_v41, %v2247_v37  ;;  %vm900_vm1 = vcmp.gt.f32.partialorder %v884_v28, 0.0 }
 0x1a4   : > { %vm902_vm13 = vcmp.gt.f32.partialorder %v886_v46, 0.0  ;;  %v918_v56 = vmul.f32 0.01, %v886_v46  ;;  %vm904_vm14 = vcmp.gt.f32.partialorder %v888_v47, 0.0  ;;  %v920_v58 = vmul.f32 0.01, %v888_v47 }
 0x1a5   : > { %vm903_vm15 = vcmp.gt.f32.partialorder %v887_v51, 0.0  ;;  %v919_v59 = vmul.f32 0.01, %v887_v51  ;;  %vm905_vm0 = vcmp.gt.f32.partialorder %v889_v52, 0.0  ;;  %v921_v1 = vmul.f32 0.01, %v889_v52  ;;  %984 = vmatprep.subr.bf16.mxu0 %v944_v55  ;;  %1037 = vmatprep.subr.bf16.mxu1 %v946_v0 }
 0x1a6   : > { %v2261_v60 = vsel %vm902_vm13, %v886_v46, %v918_v56  ;;  %985 = vmatpush1.bf16.msra.mxu0 %v943_v32  ;;  %1038 = vmatpush1.bf16.msra.mxu1 %v945_v38  ;;  %v2263_v61 = vsel %vm904_vm14, %v888_v47, %v920_v58  ;;  %v2266_v63 = vsel %vm899_vm11, %v883_v33, %v915_v44  ;;  %vm977_vm2 = vcmask 261120   ;;  %v961_v38 = vpop.permute.xlu1 %960 }
 0x1a7   : > { %v2268_v2 = vsel %vm903_vm15, %v887_v51, %v919_v59  ;;  %v2271_v3 = vsel %vm898_vm10, %v882_v27, %v914_v39  ;;  %v2276_v5 = vsel %vm901_vm12, %v885_v34, %v917_v45  ;;  %v2278_v6 = vsel %vm905_vm0, %v889_v52, %v921_v1 }
 0x1a8   : > { %v948_v4 = vpack.c.bf16 %v2268_v2, %v2266_v63  ;;  %v2280_v7 = vsel %vm900_vm1, %v884_v28, %v916_v43  ;;  %v947_v8 = vpack.c.bf16 %v2261_v60, %v2271_v3  ;;  %v950_v9 = vpack.c.bf16 %v2278_v6, %v2276_v5 }
 0x1a9   : > { %v949_v10 = vpack.c.bf16 %v2263_v61, %v2280_v7  ;;  %v1877_v13 = vmov 2  }
 0x1aa   : > { %986 = vmatprep.subr.bf16.mxu0 %v948_v4  ;;  %1039 = vmatprep.subr.bf16.mxu1 %v950_v9 }
 0x1ab   : > { %987 = vmatpush1.bf16.msra.mxu0 %v947_v8  ;;  %1040 = vmatpush1.bf16.msra.mxu1 %v949_v10 }
 0x1ac   : > { %1800 = vset.pattern.permute.xlu0 %v1877_v13  ;;  %1801 = vset.pattern.permute.xlu1 %v1877_v13 }
 0x1ad   : > { %1168 = vperm.xlu0 %1800, %v2079_v49   ;;  %1172 = vperm.xlu1 %1801, %v2097_v57  }
 0x1ae   : > { %1597 = vmatmul.mubr.msk.bf16.vlgmr.msra.gmra.mrb[8].mxu0 %vm977_vm2, %v1806_v11  ;;  %1599 = vmatmul.mubr.msk.bf16.vlgmr.msra.gmra.mrb[8].mxu1 %vm977_vm2, %v1806_v11 }
 0x1af   : > { %1026 = vmatprep.mubr.bf16.mxu0 %v1875_v53  ;;  %1079 = vmatprep.mubr.bf16.mxu1 %v1875_v53 }
 0x1b1   : > { %1180 = vperm.xlu0 %1800, %v2106_v62   ;;  %1176 = vperm.xlu1 %1801, %v2088_v54  }
 0x1b6   : > { %1598 = vmatmul.mubr.msk.bf16.gmra.mrb[12].mxu0 %vm977_vm2, %v1807_v12  ;;  %1600 = vmatmul.mubr.msk.bf16.gmra.mrb[12].mxu1 %vm977_vm2, %v1807_v12 }
 0x1b7   : > { %1231 = vmatprep.mubr.bf16.mxu0 %v1875_v53  ;;  %1284 = vmatprep.mubr.bf16.mxu1 %v1875_v53 }
 0x281   : > { %v1018_v15 = vpop.f32.mrb[8].mxu0  ;;  %v1071_v18 = vpop.f32.mrb[8].mxu1 }
 0x282   : > { %v1019_v17 = vadd.f32 %v1018_v15, %v953_v14  ;;  %v1020_v20 = vpop.f32.mrb[9].mxu0  ;;  %v1072_v21 = vadd.f32 %v1071_v18, %v953_v14  ;;  %v1073_v25 = vpop.f32.mrb[9].mxu1 }
 0x283   : > { %v1021_v24 = vadd.f32 %v1020_v20, %v953_v14  ;;  %v1022_v27 = vpop.f32.mrb[10].mxu0  ;;  %v1074_v29 = vadd.f32 %v1073_v25, %v953_v14  ;;  %v1075_v32 = vpop.f32.mrb[10].mxu1 }
 0x284   : > { %vm1090_vm3 = vcmp.gt.f32.partialorder %v1019_v17, 0.0  ;;  %v1106_v28 = vmul.f32 0.01, %v1019_v17  ;;  %v1023_v30 = vadd.f32 %v1022_v27, %v957_v16  ;;  %v1024_v57 = vpop.f32.mrb[11].mxu0  ;;  %v1108_v33 = vmul.f32 0.01, %v1072_v21  ;;  %v965_v18 = vpop.permute.xlu1 %964 }
 0x285   : > { %v1107_v62 = vmul.f32 0.01, %v1021_v24  ;;  %vm1092_vm4 = vcmp.gt.f32.partialorder %v1072_v21, 0.0  ;;  %vm1091_vm5 = vcmp.gt.f32.partialorder %v1021_v24, 0.0  ;;  %v1109_v54 = vmul.f32 0.01, %v1074_v29 }
 0x286   : > { %v1122_v34 = vsel %vm1090_vm3, %v1019_v17, %v1106_v28  ;;  %v1077_v35 = vpop.f32.mrb[11].mxu1  ;;  %vm1093_vm6 = vcmp.gt.f32.partialorder %v1074_v29, 0.0  ;;  %vm1094_vm7 = vcmp.gt.f32.partialorder %v1023_v30, 0.0  ;;  %v1110_v36 = vmul.f32 0.01, %v1023_v30 }
 0x287   : > { %v1076_v39 = vadd.f32 %v1075_v32, %v957_v16  ;;  %v1025_v42 = vadd.f32 %v1024_v57, %v957_v16  ;;  %v2307_v43 = vadd.f32 %v1122_v34, %v2232_v19  ;;  %v1124_v44 = vsel %vm1092_vm4, %v1072_v21, %v1108_v33 }
 0x288   : > { %v1123_v45 = vsel %vm1091_vm5, %v1021_v24, %v1107_v62  ;;  %v1078_v46 = vadd.f32 %v1077_v35, %v957_v16  ;;  %v1125_v48 = vsel %vm1093_vm6, %v1074_v29, %v1109_v54  ;;  %v1126_v50 = vsel %vm1094_vm7, %v1023_v30, %v1110_v36 }
 0x289   : > { %v1028_v47 = vpop.f32.mrb[12].mxu0  ;;  %vm1096_vm8 = vcmp.gt.f32.partialorder %v1076_v39, 0.0  ;;  %v1112_v51 = vmul.f32 0.01, %v1076_v39  ;;  %v1081_v52 = vpop.f32.mrb[12].mxu1  ;;  %vm1095_vm9 = vcmp.gt.f32.partialorder %v1025_v42, 0.0  ;;  %v2310_v10 = vadd.f32 %v1124_v44, %v2239_v26 }
 0x28a   : > { %v1030_v55 = vpop.f32.mrb[13].mxu0  ;;  %v1111_v0 = vmul.f32 0.01, %v1025_v42  ;;  %v1113_v56 = vmul.f32 0.01, %v1078_v46  ;;  %v1029_v58 = vadd.f32 %v1028_v47, %v961_v38  ;;  %v1083_v59 = vpop.f32.mrb[13].mxu1  ;;  %v1082_v4 = vadd.f32 %v1081_v52, %v961_v38 }
 0x28b   : > { %v1128_v1 = vsel %vm1096_vm8, %v1076_v39, %v1112_v51  ;;  %vm1097_vm10 = vcmp.gt.f32.partialorder %v1078_v46, 0.0  ;;  %v1031_v19 = vadd.f32 %v1030_v55, %v961_v38  ;;  %v1032_v8 = vpop.f32.mrb[14].mxu0  ;;  %v1085_v9 = vpop.f32.mrb[14].mxu1  ;;  %v1084_v11 = vadd.f32 %v1083_v59, %v961_v38 }
 0x28c   : > { %v1034_v12 = vpop.f32.mrb[15].mxu0  ;;  %v1087_v13 = vpop.f32.mrb[15].mxu1  ;;  %v2313_v14 = vadd.f32 %v1123_v45, %v2242_v31  ;;  %v2316_v15 = vadd.f32 %v1125_v48, %v2247_v37  ;;  %v2319_v16 = vadd.f32 %v1126_v50, %v2234_v22  ;;  %v2322_v17 = vadd.f32 %v1128_v1, %v2236_v23 }
 0x28d   : > { %vm1098_vm11 = vcmp.gt.f32.partialorder %v1029_v58, 0.0  ;;  %v1114_v20 = vmul.f32 0.01, %v1029_v58  ;;  %v1127_v26 = vsel %vm1095_vm9, %v1025_v42, %v1111_v0  ;;  %v1129_v21 = vsel %vm1097_vm10, %v1078_v46, %v1113_v56  ;;  %v1169_v0 = vpop.permute.xlu0 %1168  ;;  %v1173_v56 = vpop.permute.xlu1 %1172 }
 0x28e   : > { %vm1100_vm12 = vcmp.gt.f32.partialorder %v1082_v4, 0.0  ;;  %v1033_v24 = vadd.f32 %v1032_v8, %v965_v18  ;;  %v1116_v31 = vmul.f32 0.01, %v1082_v4  ;;  %v1115_v25 = vmul.f32 0.01, %v1031_v19 }
 0x28f   : > { %v1086_v27 = vadd.f32 %v1085_v9, %v965_v18  ;;  %v1035_v37 = vadd.f32 %v1034_v12, %v965_v18  ;;  %v1130_v28 = vsel %vm1098_vm11, %v1029_v58, %v1114_v20  ;;  %vm1099_vm13 = vcmp.gt.f32.partialorder %v1031_v19, 0.0 }
 0x290   : > { %vm1101_vm14 = vcmp.gt.f32.partialorder %v1084_v11, 0.0  ;;  %v1117_v22 = vmul.f32 0.01, %v1084_v11  ;;  %vm1102_vm15 = vcmp.gt.f32.partialorder %v1033_v24, 0.0  ;;  %v1118_v23 = vmul.f32 0.01, %v1033_v24 }
 0x291   : > { %vm1104_vm0 = vcmp.gt.f32.partialorder %v1086_v27, 0.0  ;;  %v1120_v29 = vmul.f32 0.01, %v1086_v27  ;;  %vm1103_vm1 = vcmp.gt.f32.partialorder %v1035_v37, 0.0  ;;  %v1119_v30 = vmul.f32 0.01, %v1035_v37 }
 0x292   : > { %v1088_v32 = vadd.f32 %v1087_v13, %v965_v18  ;;  %v2327_v57 = vadd.f32 %v1127_v26, %v2252_v40  ;;  %v1132_v33 = vsel %vm1100_vm12, %v1082_v4, %v1116_v31  ;;  %v1131_v62 = vsel %vm1099_vm13, %v1031_v19, %v1115_v25 }
 0x293   : > { %v1134_v34 = vsel %vm1102_vm15, %v1033_v24, %v1118_v23  ;;  %v2331_v54 = vadd.f32 %v1129_v21, %v2255_v41  ;;  %v1133_v35 = vsel %vm1101_vm14, %v1084_v11, %v1117_v22  ;;  %v1136_v36 = vsel %vm1104_vm0, %v1086_v27, %v1120_v29 }
 0x294   : > { %v1135_v38 = vsel %vm1103_vm1, %v1035_v37, %v1119_v30  ;;  %vm1105_vm3 = vcmp.gt.f32.partialorder %v1088_v32, 0.0  ;;  %v1121_v39 = vmul.f32 0.01, %v1088_v32  ;;  %v1160_v42 = vpack.c.bf16 %v2327_v57, %v2313_v14  ;;  %v1177_v30 = vpop.permute.xlu1 %1176 }
 0x295   : > { %v1162_v44 = vpack.c.bf16 %v2331_v54, %v2316_v15  ;;  %v1159_v40 = vpack.c.bf16 %v2319_v16, %v2307_v43  ;;  %v2340_v45 = vadd.f32 %v1134_v34, %v2261_v60  ;;  %v1161_v41 = vpack.c.bf16 %v2322_v17, %v2310_v10 }
 0x296   : > { %v2345_v46 = vadd.f32 %v1131_v62, %v2266_v63  ;;  %v2348_v47 = vadd.f32 %v1135_v38, %v2268_v2  ;;  %v2351_v48 = vadd.f32 %v1130_v28, %v2271_v3  ;;  %v2354_v50 = vadd.f32 %v1136_v36, %v2263_v61  ;;  %1199 = vmatprep.subr.bf16.mxu0 %v1160_v42 }
 0x297   : > { %v1137_v51 = vsel %vm1105_vm3, %v1088_v32, %v1121_v39  ;;  %1252 = vmatprep.subr.bf16.mxu1 %v1162_v44  ;;  %1200 = vmatpush1.bf16.msra.mxu0 %v1159_v40  ;;  %v2359_v63 = vadd.f32 %v1133_v35, %v2276_v5  ;;  %v2365_v3 = vadd.f32 %v1132_v33, %v2280_v7  ;;  %v1808_v5 = vld [vmem:[%s2473_s2 + $0x20] sm:$0xff]   ;;  %v1878_v7 = vmov 3  }
 0x298   : > { %1253 = vmatpush1.bf16.msra.mxu1 %v1161_v41  ;;  %v1164_v60 = vpack.c.bf16 %v2348_v47, %v2345_v46  ;;  %v2362_v2 = vadd.f32 %v1137_v51, %v2278_v6  ;;  %v1163_v52 = vpack.c.bf16 %v2340_v45, %v2351_v48  ;;  %v1809_v6 = vld [vmem:[%s2473_s2 + $0x28] sm:$0xff]   ;;  %1802 = vset.pattern.permute.xlu1 %v1878_v7 }
 0x299   : > { %v1165_v55 = vpack.c.bf16 %v2354_v50, %v2365_v3  ;;  %1803 = vset.pattern.permute.xlu0 %v1878_v7  ;;  %1380 = vperm.xlu1 %1802, %v2079_v49  }
 0x29a   : > { %1201 = vmatprep.subr.bf16.mxu0 %v1164_v60  ;;  %v1166_v61 = vpack.c.bf16 %v2362_v2, %v2359_v63 }
 0x29b   : > { %1202 = vmatpush1.bf16.msra.mxu0 %v1163_v52 }
 0x29c   : > { %1254 = vmatprep.subr.bf16.mxu1 %v1166_v61 }
 0x29d   : > { %1255 = vmatpush1.bf16.msra.mxu1 %v1165_v55 }
 0x29e   : > { %1607 = vmatmul.mubr.msk.bf16.vlgmr.msra.gmra.mrb[16].mxu0 %vm977_vm2, %v1808_v5 }
 0x29f   : > { %1241 = vmatprep.mubr.bf16.mxu0 %v1875_v53 }
 0x2a0   : > { %1609 = vmatmul.mubr.msk.bf16.vlgmr.msra.gmra.mrb[16].mxu1 %vm977_vm2, %v1808_v5 }
 0x2a1   : > { %1294 = vmatprep.mubr.bf16.mxu1 %v1875_v53 }
 0x2a6   : > { %1608 = vmatmul.mubr.msk.bf16.gmra.mrb[20].mxu0 %vm977_vm2, %v1809_v6 }
 0x2a7   : > { %1418 = vmatprep.mubr.bf16.mxu0 %v1875_v53 }
 0x2a8   : > { %1610 = vmatmul.mubr.msk.bf16.gmra.mrb[20].mxu1 %vm977_vm2, %v1809_v6 }
 0x2a9   : > { %1459 = vmatprep.mubr.bf16.mxu1 %v1875_v53 }
 0x371   : > { %v1233_v58 = vpop.f32.mrb[16].mxu0 }
 0x372   : > { %v1234_v59 = vadd.f32 %v1233_v58, %v1169_v0  ;;  %v1235_v4 = vpop.f32.mrb[17].mxu0 }
 0x373   : > { %v1286_v1 = vpop.f32.mrb[16].mxu1  ;;  %v1236_v8 = vadd.f32 %v1235_v4, %v1169_v0  ;;  %v1237_v11 = vpop.f32.mrb[18].mxu0 }
 0x374   : > { %v1287_v19 = vadd.f32 %v1286_v1, %v1169_v0  ;;  %v1288_v9 = vpop.f32.mrb[17].mxu1  ;;  %vm1305_vm4 = vcmp.gt.f32.partialorder %v1234_v59, 0.0  ;;  %v1321_v12 = vmul.f32 0.01, %v1234_v59  ;;  %v1238_v18 = vadd.f32 %v1237_v11, %v1173_v56  ;;  %v1239_v20 = vpop.f32.mrb[19].mxu0 }
 0x375   : > { %v1289_v13 = vadd.f32 %v1288_v9, %v1169_v0  ;;  %v1290_v53 = vpop.f32.mrb[18].mxu1  ;;  %vm1306_vm6 = vcmp.gt.f32.partialorder %v1236_v8, 0.0  ;;  %v1322_v49 = vmul.f32 0.01, %v1236_v8  ;;  %v1240_v32 = vadd.f32 %v1239_v20, %v1173_v56  ;;  %v1181_v0 = vpop.permute.xlu0 %1180 }
 0x376   : > { %vm1307_vm5 = vcmp.gt.f32.partialorder %v1287_v19, 0.0  ;;  %v1323_v26 = vmul.f32 0.01, %v1287_v19  ;;  %v1337_v21 = vsel %vm1305_vm4, %v1234_v59, %v1321_v12  ;;  %vm1309_vm8 = vcmp.gt.f32.partialorder %v1238_v18, 0.0  ;;  %v1292_v31 = vpop.f32.mrb[19].mxu1 }
 0x377   : > { %vm1308_vm7 = vcmp.gt.f32.partialorder %v1289_v13, 0.0  ;;  %v1324_v24 = vmul.f32 0.01, %v1289_v13  ;;  %v2389_v25 = vadd.f32 %v1337_v21, %v2307_v43  ;;  %v1338_v37 = vsel %vm1306_vm6, %v1236_v8, %v1322_v49 }
 0x378   : > { %v1339_v27 = vsel %vm1307_vm5, %v1287_v19, %v1323_v26  ;;  %v1325_v28 = vmul.f32 0.01, %v1238_v18  ;;  %v1291_v29 = vadd.f32 %v1290_v53, %v1173_v56  ;;  %v1293_v62 = vadd.f32 %v1292_v31, %v1173_v56 }
 0x379   : > { %v2392_v22 = vadd.f32 %v1339_v27, %v2310_v10  ;;  %v1340_v23 = vsel %vm1308_vm7, %v1289_v13, %v1324_v24  ;;  %v1243_v34 = vpop.f32.mrb[20].mxu0  ;;  %v2395_v35 = vadd.f32 %v1338_v37, %v2313_v14  ;;  %vm1310_vm10 = vcmp.gt.f32.partialorder %v1240_v32, 0.0 }
 0x37a   : > { %v1341_v33 = vsel %vm1309_vm8, %v1238_v18, %v1325_v28  ;;  %v2398_v36 = vadd.f32 %v1340_v23, %v2316_v15  ;;  %vm1311_vm9 = vcmp.gt.f32.partialorder %v1291_v29, 0.0  ;;  %v1327_v38 = vmul.f32 0.01, %v1291_v29  ;;  %v1245_v39 = vpop.f32.mrb[21].mxu0 }
 0x37b   : > { %v2401_v43 = vadd.f32 %v1341_v33, %v2319_v16  ;;  %v1296_v10 = vpop.f32.mrb[20].mxu1  ;;  %v1326_v42 = vmul.f32 0.01, %v1240_v32  ;;  %vm1312_vm11 = vcmp.gt.f32.partialorder %v1293_v62, 0.0  ;;  %v1328_v44 = vmul.f32 0.01, %v1293_v62 }
 0x37c   : > { %v1244_v40 = vadd.f32 %v1243_v34, %v1177_v30  ;;  %v1298_v41 = vpop.f32.mrb[21].mxu1  ;;  %v1343_v51 = vsel %vm1311_vm9, %v1291_v29, %v1327_v38  ;;  %v1297_v60 = vadd.f32 %v1296_v10, %v1177_v30  ;;  %v1246_v14 = vadd.f32 %v1245_v39, %v1177_v30  ;;  %v1247_v52 = vpop.f32.mrb[22].mxu0 }
 0x37d   : > { %v1299_v61 = vadd.f32 %v1298_v41, %v1177_v30  ;;  %v1300_v15 = vpop.f32.mrb[22].mxu1  ;;  %v1359_v55 = vadd.f32 %v1343_v51, %v2322_v17  ;;  %v1342_v16 = vsel %vm1310_vm10, %v1240_v32, %v1326_v42  ;;  %v1344_v5 = vsel %vm1312_vm11, %v1293_v62, %v1328_v44  ;;  %v1249_v6 = vpop.f32.mrb[23].mxu0 }
 0x37e   : > { %vm1313_vm12 = vcmp.gt.f32.partialorder %v1244_v40, 0.0  ;;  %v1302_v7 = vpop.f32.mrb[23].mxu1  ;;  %v1329_v56 = vmul.f32 0.01, %v1244_v40  ;;  %vm1315_vm13 = vcmp.gt.f32.partialorder %v1297_v60, 0.0  ;;  %vm1314_vm14 = vcmp.gt.f32.partialorder %v1246_v14, 0.0 }
 0x37f   : > { %v1331_v58 = vmul.f32 0.01, %v1297_v60  ;;  %v1330_v59 = vmul.f32 0.01, %v1246_v14  ;;  %vm1316_vm15 = vcmp.gt.f32.partialorder %v1299_v61, 0.0  ;;  %v1248_v4 = vadd.f32 %v1247_v52, %v1181_v0 }
 0x380   : > { %v1332_v1 = vmul.f32 0.01, %v1299_v61  ;;  %v1345_v19 = vsel %vm1313_vm12, %v1244_v40, %v1329_v56  ;;  %v1301_v9 = vadd.f32 %v1300_v15, %v1181_v0  ;;  %v1250_v11 = vadd.f32 %v1249_v6, %v1181_v0 }
 0x381   : > { %v1347_v8 = vsel %vm1315_vm13, %v1297_v60, %v1331_v58  ;;  %v1361_v17 = vadd.f32 %v1345_v19, %v2351_v48  ;;  %v1346_v13 = vsel %vm1314_vm14, %v1246_v14, %v1330_v59  ;;  %vm1317_vm0 = vcmp.gt.f32.partialorder %v1248_v4, 0.0 }
 0x382   : > { %v1363_v12 = vadd.f32 %v1347_v8, %v2365_v3  ;;  %v1348_v18 = vsel %vm1316_vm15, %v1299_v61, %v1332_v1  ;;  %v1333_v53 = vmul.f32 0.01, %v1248_v4  ;;  %vm1319_vm1 = vcmp.gt.f32.partialorder %v1301_v9, 0.0 }
 0x383   : > { %v1335_v20 = vmul.f32 0.01, %v1301_v9  ;;  %vm1318_vm3 = vcmp.gt.f32.partialorder %v1250_v11, 0.0  ;;  %v1334_v26 = vmul.f32 0.01, %v1250_v11  ;;  %v1303_v49 = vadd.f32 %v1302_v7, %v1181_v0 }
 0x384   : > { %v1358_v21 = vadd.f32 %v1342_v16, %v2327_v57  ;;  %v1349_v24 = vsel %vm1317_vm0, %v1248_v4, %v1333_v53  ;;  %v1360_v27 = vadd.f32 %v1344_v5, %v2331_v54  ;;  %v1371_v48 = vpack.c.bf16 %v2401_v43, %v2389_v25 }
 0x385   : > { %v1351_v31 = vsel %vm1319_vm1, %v1301_v9, %v1335_v20  ;;  %v1365_v3 = vadd.f32 %v1349_v24, %v2340_v45  ;;  %v1350_v28 = vsel %vm1318_vm3, %v1250_v11, %v1334_v26  ;;  %vm1320_vm4 = vcmp.gt.f32.partialorder %v1303_v49, 0.0 }
 0x386   : > { %v1367_v37 = vadd.f32 %v1351_v31, %v2354_v50  ;;  %v1336_v23 = vmul.f32 0.01, %v1303_v49  ;;  %v1372_v29 = vpack.c.bf16 %v1358_v21, %v2395_v35  ;;  %v1374_v30 = vpack.c.bf16 %v1360_v27, %v2398_v36 }
 0x387   : > { %v1373_v57 = vpack.c.bf16 %v1359_v55, %v2392_v22  ;;  %v1362_v32 = vadd.f32 %v1346_v13, %v2345_v46  ;;  %v1366_v54 = vadd.f32 %v1350_v28, %v2348_v47  ;;  %v1375_v33 = vpack.c.bf16 %v1365_v3, %v1361_v17  ;;  %v1611_v46 = vld [vmem:[%s2473_s2 + $0x30] sm:$0xf]  ;;  %v1381_v47 = vpop.permute.xlu1 %1380 }
 0x388   : > { %v1352_v62 = vsel %vm1320_vm4, %v1303_v49, %v1336_v23  ;;  %1386 = vmatprep.subr.bf16.mxu0 %v1372_v29  ;;  %1427 = vmatprep.subr.bf16.mxu1 %v1374_v30  ;;  %v1377_v45 = vpack.c.bf16 %v1367_v37, %v1363_v12  ;;  %v1364_v25 = vadd.f32 %v1348_v18, %v2359_v63 }
 0x389   : > { %1387 = vmatpush1.bf16.msra.mxu0 %v1371_v48  ;;  %1428 = vmatpush1.bf16.msra.mxu1 %v1373_v57  ;;  %v1376_v50 = vpack.c.bf16 %v1366_v54, %v1362_v32  ;;  %v1368_v34 = vadd.f32 %v1352_v62, %v2362_v2 }
 0x38b   : > { %1388 = vmatprep.subr.bf16.mxu0 %v1376_v50  ;;  %v1378_v35 = vpack.c.bf16 %v1368_v34, %v1364_v25 }
 0x38d   : > { %1429 = vmatprep.subr.bf16.mxu1 %v1378_v35  ;;  %1389 = vmatpush1.bf16.msra.mxu0 %v1375_v33 }
 0x38e   : > { %1430 = vmatpush1.bf16.msra.mxu1 %v1377_v45 }
 0x390   : > { %1612 = vmatmul.mubr.msk.bf16.vlgmr.msra.gmra.mrb[24].mxu0 %vm977_vm2, %v1611_v46 }
 0x391   : > { %1613 = vmatmul.mubr.msk.bf16.vlgmr.msra.gmra.mrb[24].mxu1 %vm977_vm2, %v1611_v46 }
 0x463   : > { %v1420_v63 = vpop.f32.mrb[24].mxu0 }
 0x464   : > { %v1461_v22 = vpop.f32.mrb[24].mxu1  ;;  %v1422_v2 = vpop.f32.mrb[25].mxu0  ;;  %v1421_v36 = vadd.f32 %v1420_v63, %v1381_v47 }
 0x465   : > { %v1463_v43 = vpop.f32.mrb[25].mxu1  ;;  %v1424_v38 = vpop.f32.mrb[26].mxu0  ;;  %v1423_v10 = vadd.f32 %v1422_v2, %v1381_v47  ;;  %v1462_v39 = vadd.f32 %v1461_v22, %v1381_v47 }
 0x466   : > { %v1465_v42 = vpop.f32.mrb[26].mxu1  ;;  %v1464_v44 = vadd.f32 %v1463_v43, %v1381_v47  ;;  %v1425_v40 = vpop.f32.mrb[27].mxu0 }
 0x467   : > { %v1621_v41 = vpack.c.bf16 %v1423_v10, %v1421_v36  ;;  %v1466_v51 = vpop.f32.mrb[27].mxu1 }
 0x468   : > { %v1622_v60 = vpack.c.bf16 %v1464_v44, %v1462_v39 }
 0x469   : > { %1484 = vst [vmem:[%s207_s27] sm:$0xff] %v1621_v41 }
 0x46a   : > { %1485 = vst [vmem:[%s207_s27 + $0x8] sm:$0xff] %v1622_v60 }
 0x46b   : > { %1823 = shalt.err (!%p1820_p3)
}
 0x46c   : > { %s1824_s10 = scalar_lea.hbm %s2429_s5, 256  ;;  %s1828_s13 = scalar_lea.hbm %s2475_s4, 1024 }
 0x46d   : > { %p1825_p4 = scmp.ne.s32.totalorder %s2429_s5, %s1824_s10  ;;  %p1829_p9 = scmp.lt.u32.totalorder %s2429_s5, %s2475_s4 }
 0x46e   : > { %p1830_p10 = scmp.lt.u32.totalorder %s1828_s13, %s1824_s10  ;;  %p1832_p12 = scmp.lt.u32.totalorder %s1824_s10, %s2429_s5 }
 0x46f   : > { %p1826_p7 = pnand %p1825_p4, %p1943_p5 }
 0x470   : > { %p1831_p11 = por %p1830_p10, %p1829_p9 }
 0x471   : > { %p1827_p8 = pneg %p1826_p7 }
 0x472   : > { %p1833_p13 = por %p1832_p12, %p1831_p11 }
 0x474   : > { %p1834_p0 = pnand %p1833_p13, %p1827_p8 }
 0x476   : > { %1837 = shalt.err (!%p1834_p0)
}
 0x477   : > { %1752 = dma.vmem_to_hbm [thread:$0]  (%p1943_p5), %s2431_s28, 256, %s2429_s5, %s1487_s19  }
 0x478 PF: > { %p1758_p1 = scmp.ge.s32.totalorder %s1872_s18, 2  ;;  %s1513_s22 = sand.u32 1, %s1860_s15  }
 0x479   : > { %s1514_s23 = scalar_lea.sflag [#allocation3], %s1513_s22 }
 0x47a   : > { %p1755_p2 = pnand %p1758_p1, %p1947_p6 }
 0x47c   : > { %1855 = dma.done.wait (!%p1755_p2), %s1514_s23, 256  }
 0x47d   : > { %1857 = vsyncadd (!%p1755_p2), %s1514_s23, 4294967040  ;;  %p14_p3 = scmp.ge.s32.totalorder %s1930_s21, 6   ;;  %s2478_s15 = smov %s1864_s16 }
 0x47e   : > { %s2479_s16 = smov %s1868_s17  ;;  %s2480_s17 = smov %s1941_s24 }
 0x47f   : > { %s2481_s18 = smov %s1930_s21  ;;  %16 = sbr.rel (!%p14_p3) target bundleno = 3 (0x3), region = 77 }
 0x486   :  { %1519 = vsyncpa [#allocation3], 1 }
 0x487   :  { %1521 = vsyncpa [#allocation3 + $0x1], 1 }

</bundles_post_ra>
